<compile_context>
chip_gen: v6e
topology: v6e:2x2x1
jax: 0.10.0
libtpu: 0.0.40
codegen_flags: <defaults>
</compile_context>

<pallas_src>
import functools

import jax
import jax.numpy as jnp
from jax.experimental import pallas as pl
from jax.experimental.pallas import tpu as pltpu

_LANE = 128          # TPU vreg lane width
_SUBLANE_BF16 = 16   # bf16 minimum sublane packing


def _round_up(x, m):
    return (x + m - 1) // m * m


def _cdiv(a, b):
    return -(-a // b)


# ----------------------------------------------------------------------------
# Kernel
# ----------------------------------------------------------------------------
def _mlp_kernel(*refs):
    """refs = (x_ref, w0, b0, w1, b1, ..., wL, bL, out_ref).

    x is read in its raw dtype and cast to the weight dtype in-kernel (VPU),
    matmuls accumulate in f32 on the MXU, bias-add + ReLU epilogue stays in f32,
    re-cast to bf16 only to feed the next matmul.  Final store is one wide
    lane-dense slab in out_ref's dtype.
    """
    x_ref = refs[0]
    out_ref = refs[-1]
    wb = refs[1:-1]
    n_layers = len(wb) // 2

    h = x_ref[...].astype(wb[0].dtype)          # (tb, d_in) -> compute dtype
    for i in range(n_layers):
        w = wb[2 * i][...]                      # (d_in_p, d_out_p)
        b = wb[2 * i + 1][...]                  # (1, d_out_p) f32
        acc = jnp.dot(h, w, preferred_element_type=jnp.float32)
        a = jnp.maximum(acc + b, 0.0)           # ReLU after every Linear
        if i + 1 < n_layers:
            h = a.astype(w.dtype)
        else:
            out_ref[...] = a.astype(out_ref.dtype)


# ----------------------------------------------------------------------------
# Param preparation (call ONCE at init — hoisted off the per-forward hot path)
# ----------------------------------------------------------------------------
def prepare_mlpnet_params(params, compute_dtype=jnp.bfloat16):
    """Pad feature dims to the 128-lane width and cast once.

    The first layer keeps its true K (the x block is read unpadded); every
    output feature dim (and subsequent K) is zero-padded to a multiple of 128.
    Weights stored in compute_dtype (MXU operands), biases in f32 (epilogue).
    Returns (prepared_params, out_dim).
    """
    prepared = []
    for i, (w, b) in enumerate(params):
        d_in, d_out = w.shape
        d_in_p = d_in if i == 0 else _round_up(d_in, _LANE)
        d_out_p = _round_up(d_out, _LANE)
        wp = jnp.pad(w, ((0, d_in_p - d_in), (0, d_out_p - d_out)))
        bp = jnp.pad(b, ((0, 0), (0, d_out_p - b.shape[1])))
        prepared.append((wp.astype(compute_dtype), bp.astype(jnp.float32)))
    return prepared, params[-1][0].shape[1]


# ----------------------------------------------------------------------------
# Forward
# ----------------------------------------------------------------------------
def _vmem_capacity_bytes():
    try:
        return int(pltpu.get_tpu_info().vmem_capacity_bytes)
    except Exception:
        return 64 * 1024 * 1024  # conservative (v7x per-TC)


_HAS_BUFFERED = hasattr(pl, "Buffered")


def _resident_spec(shape):
    # Constant block index -> stays VMEM-resident across grid steps; single
    # buffer so the pipeliner doesn't allocate 2x for never-changing data.
    if _HAS_BUFFERED:
        return pl.BlockSpec(shape, lambda i: (0, 0),
                            pipeline_mode=pl.Buffered(buffer_count=1))
    return pl.BlockSpec(shape, lambda i: (0, 0))


def mlpnet_forward(x, prepared_params, out_dim, *, out_dtype=jnp.bfloat16,
                   max_batch_tile=2048):
    """x: (batch, emb_dim*n_cols) in f32/bf16; prepared_params from
    prepare_mlpnet_params(); returns (batch, out_dim) in out_dtype."""
    batch, in_dim = x.shape
    assert prepared_params[0][0].shape[0] == in_dim, "x feature dim mismatch"
    out_dim_p = prepared_params[-1][0].shape[1]

    cdtype = prepared_params[0][0].dtype
    cbytes = jnp.dtype(cdtype).itemsize
    xbytes = jnp.dtype(x.dtype).itemsize
    obytes = jnp.dtype(out_dtype).itemsize

    # --- generation-aware VMEM budget (128 MiB v5e/v6e, 64 MiB v7x per TC) ---
    vmem_cap = _vmem_capacity_bytes()
    vmem_budget = (vmem_cap * 3) // 4          # headroom for Mosaic internals
    weight_buf_factor = 1 if _HAS_BUFFERED else 2
    weight_bytes = weight_buf_factor * sum(
        w.size * w.dtype.itemsize + b.size * b.dtype.itemsize
        for w, b in prepared_params)

    dims = [in_dim] + [w.shape[1] for w, _ in prepared_params]
    max_dim = max(dims)
    per_row = (2 * in_dim * xbytes           # double-buffered x tile (raw dtype)
               + in_dim * cbytes             # in-kernel cast copy
               + 2 * out_dim_p * obytes      # double-buffered output tile
               + 2 * max_dim * 4             # f32 accumulator / epilogue
               + max_dim * cbytes)           # cast copy feeding next matmul

    avail = vmem_budget - weight_bytes
    if avail < _SUBLANE_BF16 * per_row:
        # TODO(synk): add a streamed-weights path (grid over layers / K,N tiles
        # via pltpu.emit_pipeline) for models whose weights can't stay resident.
        raise ValueError(
            f"Resident MLP weights ({weight_bytes / 2**20:.1f} MiB) leave no room "
            f"for activation tiles in the {vmem_budget / 2**20:.1f} MiB VMEM budget.")

    # --- batch tile: lane/sublane-dense, >=2 grid steps for large batches ----
    tb = min(max_batch_tile, avail // per_row)
    if tb >= _LANE:
        tb = (tb // _LANE) * _LANE
    else:
        tb = max(_SUBLANE_BF16, (tb // _SUBLANE_BF16) * _SUBLANE_BF16)
    if batch >= 4 * _LANE:  # keep both v7x TensorCores busy
        tb = min(tb, _round_up(_cdiv(batch, 2), _LANE))
    tb = min(tb, _round_up(batch, _SUBLANE_BF16))
    batch_p = _round_up(batch, tb)

    x_p = x if batch_p == batch else jnp.pad(x, ((0, batch_p - batch), (0, 0)))

    flat_args = [x_p]
    # Raw-dtype x block; last dim equals the full array dim so no 128-pad needed.
    in_specs = [pl.BlockSpec((tb, in_dim), lambda i: (i, 0))]
    for w, b in prepared_params:
        flat_args += [w, b]
        in_specs.append(_resident_spec(w.shape))
        in_specs.append(_resident_spec(b.shape))

    flops = 2 * batch_p * sum(w.shape[0] * w.shape[1] for w, _ in prepared_params)
    bytes_accessed = (batch_p * in_dim * xbytes
                      + batch_p * out_dim_p * obytes
                      + weight_bytes // weight_buf_factor)

    out_p = pl.pallas_call(
        _mlp_kernel,
        out_shape=jax.ShapeDtypeStruct((batch_p, out_dim_p), out_dtype),
        grid=(batch_p // tb,),
        in_specs=in_specs,
        out_specs=pl.BlockSpec((tb, out_dim_p), lambda i: (i, 0)),
        compiler_params=pltpu.CompilerParams(
            dimension_semantics=("parallel",),   # shard batch across TCs on v7x
            vmem_limit_bytes=vmem_budget,
        ),
        cost_estimate=pl.CostEstimate(flops=flops, transcendentals=0,
                                      bytes_accessed=bytes_accessed),
    )(*flat_args)

    return out_p[:batch, :out_dim]


# ----------------------------------------------------------------------------
# Init + reference
# ----------------------------------------------------------------------------
def init_mlpnet_params(key, emb_dim, n_cols, out_dim, n_layers, hidden_dim):
    """Deterministic init mirroring nn.Linear default (U(-1/sqrt(fan_in), +))."""
    input_dim = emb_dim * n_cols
    body_dims = [input_dim if i == 0 else hidden_dim for i in range(n_layers)]
    head_dims = [hidden_dim, out_dim]
    dims_pairs = list(zip(body_dims[:-1], body_dims[1:])) + list(
        zip(head_dims[:-1], head_dims[1:]))

    params = []
    for d_in, d_out in dims_pairs:
        key, kw, kb = jax.random.split(key, 3)
        bound = 1.0 / jnp.sqrt(jnp.float32(d_in))
        # Stored directly as (d_in, d_out) == transposed PyTorch Linear weight.
        w = jax.random.uniform(kw, (d_in, d_out), jnp.float32, -bound, bound)
        b = jax.random.uniform(kb, (1, d_out), jnp.float32, -bound, bound)
        params.append((w, b))
    return params


def reference_forward(x, params, compute_dtype=jnp.bfloat16,
                      out_dtype=jnp.bfloat16):
    """Plain-JAX reference with the same bf16-operand / f32-accumulate path."""
    h = x
    for w, b in params:
        acc = jnp.dot(h.astype(compute_dtype), w.astype(compute_dtype),
                      preferred_element_type=jnp.float32)
        h = jnp.maximum(acc + b.astype(jnp.float32), 0.0)
    return h.astype(out_dtype)


if __name__ == "__main__":
    # Small shapes consistent with the module constructor.
    emb_dim, n_cols = 4, 8          # input_dim = 32
    out_dim = 8
    n_layers = 3                    # body has n_layers - 1 = 2 Linear+ReLU layers
    hidden_dim = 32
    batch = 8

    key = jax.random.PRNGKey(0)
    key, kx = jax.random.split(key)

    # TODO(synk): Embedding() in the reference has no forward; input here is the
    # already-embedded, flattened features of shape (batch, emb_dim*n_cols).
    x = jax.random.normal(kx, (batch, emb_dim * n_cols), jnp.float32)

    params = init_mlpnet_params(key, emb_dim, n_cols, out_dim, n_layers, hidden_dim)

    # Pad/cast weights ONCE (off the per-forward hot path).
    prepared, head_out_dim = prepare_mlpnet_params(params)

    fwd = jax.jit(functools.partial(mlpnet_forward, out_dim=head_out_dim))
    out = fwd(x, prepared)
    out = jax.block_until_ready(out)

    ref = reference_forward(x, params)
    assert out.shape == (batch, out_dim), out.shape
    # bf16 operands + bf16 output store: compare at bf16-appropriate tolerance.
    assert jnp.allclose(out.astype(jnp.float32), ref.astype(jnp.float32),
                        atol=1e-2, rtol=1e-2), float(
        jnp.max(jnp.abs(out.astype(jnp.float32) - ref.astype(jnp.float32))))

    print("KERNEL_OK")
</pallas_src>

<mosaic_0001>
module attributes {stable_mosaic.version = 11 : i64} {
  func.func @_mlp_kernel(%arg0: i32, %arg1: memref<16x32xf32, #tpu.memory_space<vmem>>, %arg2: memref<32x128xbf16, #tpu.memory_space<vmem>>, %arg3: memref<1x128xf32, #tpu.memory_space<vmem>>, %arg4: memref<128x128xbf16, #tpu.memory_space<vmem>>, %arg5: memref<1x128xf32, #tpu.memory_space<vmem>>, %arg6: memref<128x128xbf16, #tpu.memory_space<vmem>>, %arg7: memref<1x128xf32, #tpu.memory_space<vmem>>, %arg8: memref<16x128xbf16, #tpu.memory_space<vmem>>) attributes {dimension_semantics = [#tpu.dimension_semantics<parallel>], iteration_bounds = array<i64: 1>, scalar_prefetch = 0 : i64, scratch_operands = 0 : i64, tpu.core_type = #tpu.core_type<tc>, window_params = [{transform_indices = @transform_0, window_bounds = array<i64: 16, 32>}, {pipeline_mode = #tpu.pipeline_mode<synchronous>, transform_indices = @transform_1, window_bounds = array<i64: 32, 128>}, {pipeline_mode = #tpu.pipeline_mode<synchronous>, transform_indices = @transform_2, window_bounds = array<i64: 1, 128>}, {pipeline_mode = #tpu.pipeline_mode<synchronous>, transform_indices = @transform_3, window_bounds = array<i64: 128, 128>}, {pipeline_mode = #tpu.pipeline_mode<synchronous>, transform_indices = @transform_4, window_bounds = array<i64: 1, 128>}, {pipeline_mode = #tpu.pipeline_mode<synchronous>, transform_indices = @transform_5, window_bounds = array<i64: 128, 128>}, {pipeline_mode = #tpu.pipeline_mode<synchronous>, transform_indices = @transform_6, window_bounds = array<i64: 1, 128>}, {transform_indices = @transform_7, window_bounds = array<i64: 16, 128>}]} {
    %c0 = arith.constant 0 : index
    %c0_0 = arith.constant 0 : index
    %0 = vector.load %arg1[%c0, %c0_0] : memref<16x32xf32, #tpu.memory_space<vmem>>, vector<16x32xf32>
    %1 = arith.truncf %0 : vector<16x32xf32> to vector<16x32xbf16>
    %c0_1 = arith.constant 0 : index
    %c0_2 = arith.constant 0 : index
    %2 = vector.load %arg2[%c0_1, %c0_2] : memref<32x128xbf16, #tpu.memory_space<vmem>>, vector<32x128xbf16>
    %c0_3 = arith.constant 0 : index
    %c0_4 = arith.constant 0 : index
    %3 = vector.load %arg3[%c0_3, %c0_4] : memref<1x128xf32, #tpu.memory_space<vmem>>, vector<1x128xf32>
    %cst = arith.constant dense<0.000000e+00> : vector<16x128xf32>
    %4 = tpu.matmul %1, %2, %cst {dimension_numbers = #tpu.dot_dimension_numbers<[1], [0], [0], [1], [0, 0, 1, 1], [], []>} : vector<16x32xbf16>, vector<32x128xbf16>, vector<16x128xf32> -> vector<16x128xf32>
    %5 = vector.broadcast %3 : vector<1x128xf32> to vector<16x128xf32>
    %6 = arith.addf %4, %5 : vector<16x128xf32>
    %cst_5 = arith.constant 0.000000e+00 : f32
    %7 = vector.broadcast %cst_5 : f32 to vector<16x128xf32>
    %8 = arith.maximumf %6, %7 : vector<16x128xf32>
    %9 = arith.truncf %8 : vector<16x128xf32> to vector<16x128xbf16>
    %c0_6 = arith.constant 0 : index
    %c0_7 = arith.constant 0 : index
    %10 = vector.load %arg4[%c0_6, %c0_7] : memref<128x128xbf16, #tpu.memory_space<vmem>>, vector<128x128xbf16>
    %c0_8 = arith.constant 0 : index
    %c0_9 = arith.constant 0 : index
    %11 = vector.load %arg5[%c0_8, %c0_9] : memref<1x128xf32, #tpu.memory_space<vmem>>, vector<1x128xf32>
    %cst_10 = arith.constant dense<0.000000e+00> : vector<16x128xf32>
    %12 = tpu.matmul %9, %10, %cst_10 {dimension_numbers = #tpu.dot_dimension_numbers<[1], [0], [0], [1], [0, 0, 1, 1], [], []>} : vector<16x128xbf16>, vector<128x128xbf16>, vector<16x128xf32> -> vector<16x128xf32>
    %13 = vector.broadcast %11 : vector<1x128xf32> to vector<16x128xf32>
    %14 = arith.addf %12, %13 : vector<16x128xf32>
    %cst_11 = arith.constant 0.000000e+00 : f32
    %15 = vector.broadcast %cst_11 : f32 to vector<16x128xf32>
    %16 = arith.maximumf %14, %15 : vector<16x128xf32>
    %17 = arith.truncf %16 : vector<16x128xf32> to vector<16x128xbf16>
    %c0_12 = arith.constant 0 : index
    %c0_13 = arith.constant 0 : index
    %18 = vector.load %arg6[%c0_12, %c0_13] : memref<128x128xbf16, #tpu.memory_space<vmem>>, vector<128x128xbf16>
    %c0_14 = arith.constant 0 : index
    %c0_15 = arith.constant 0 : index
    %19 = vector.load %arg7[%c0_14, %c0_15] : memref<1x128xf32, #tpu.memory_space<vmem>>, vector<1x128xf32>
    %cst_16 = arith.constant dense<0.000000e+00> : vector<16x128xf32>
    %20 = tpu.matmul %17, %18, %cst_16 {dimension_numbers = #tpu.dot_dimension_numbers<[1], [0], [0], [1], [0, 0, 1, 1], [], []>} : vector<16x128xbf16>, vector<128x128xbf16>, vector<16x128xf32> -> vector<16x128xf32>
    %21 = vector.broadcast %19 : vector<1x128xf32> to vector<16x128xf32>
    %22 = arith.addf %20, %21 : vector<16x128xf32>
    %cst_17 = arith.constant 0.000000e+00 : f32
    %23 = vector.broadcast %cst_17 : f32 to vector<16x128xf32>
    %24 = arith.maximumf %22, %23 : vector<16x128xf32>
    %25 = arith.truncf %24 : vector<16x128xf32> to vector<16x128xbf16>
    %c0_18 = arith.constant 0 : index
    %c0_19 = arith.constant 0 : index
    %26 = vector.load %arg8[%c0_18, %c0_19] : memref<16x128xbf16, #tpu.memory_space<vmem>>, vector<16x128xbf16>
    tpu.vector_store %arg8[%c0_18, %c0_19], %25 {strides = array<i32>} : memref<16x128xbf16, #tpu.memory_space<vmem>>, vector<16x128xbf16>,
    return
  }
  func.func @transform_0(%arg0: i32) -> (i32, i32) {
    %c0_i32 = arith.constant 0 : i32
    %c0_i32_0 = arith.constant 0 : i32
    return %arg0, %c0_i32 : i32, i32
  }
  func.func @transform_1(%arg0: i32) -> (i32, i32) {
    %c0_i32 = arith.constant 0 : i32
    %c0_i32_0 = arith.constant 0 : i32
    %c0_i32_1 = arith.constant 0 : i32
    return %c0_i32, %c0_i32_0 : i32, i32
  }
  func.func @transform_2(%arg0: i32) -> (i32, i32) {
    %c0_i32 = arith.constant 0 : i32
    %c0_i32_0 = arith.constant 0 : i32
    %c0_i32_1 = arith.constant 0 : i32
    return %c0_i32, %c0_i32_0 : i32, i32
  }
  func.func @transform_3(%arg0: i32) -> (i32, i32) {
    %c0_i32 = arith.constant 0 : i32
    %c0_i32_0 = arith.constant 0 : i32
    %c0_i32_1 = arith.constant 0 : i32
    return %c0_i32, %c0_i32_0 : i32, i32
  }
  func.func @transform_4(%arg0: i32) -> (i32, i32) {
    %c0_i32 = arith.constant 0 : i32
    %c0_i32_0 = arith.constant 0 : i32
    %c0_i32_1 = arith.constant 0 : i32
    return %c0_i32, %c0_i32_0 : i32, i32
  }
  func.func @transform_5(%arg0: i32) -> (i32, i32) {
    %c0_i32 = arith.constant 0 : i32
    %c0_i32_0 = arith.constant 0 : i32
    %c0_i32_1 = arith.constant 0 : i32
    return %c0_i32, %c0_i32_0 : i32, i32
  }
  func.func @transform_6(%arg0: i32) -> (i32, i32) {
    %c0_i32 = arith.constant 0 : i32
    %c0_i32_0 = arith.constant 0 : i32
    %c0_i32_1 = arith.constant 0 : i32
    return %c0_i32, %c0_i32_0 : i32, i32
  }
  func.func @transform_7(%arg0: i32) -> (i32, i32) {
    %c0_i32 = arith.constant 0 : i32
    %c0_i32_0 = arith.constant 0 : i32
    return %arg0, %c0_i32 : i32, i32
  }
}

</mosaic_0001>

<bundles_post_ra>
// kernel: mlpnet_forward.1
= control target key start
LH: loop header
LB: loop body
LE: loop exit
PB: predicated region body
PF: predicated region fallthrough
CT: control target
= control target key end

     0   :  { %12 = vsyncpa [#allocation3], 0  ;;  %s642_s0 = inlined_call_operand.vmem [shape: f32[16,32], index: 0, kind: input, shape index: {}]   ;;  %s643_s1 = inlined_call_operand.vmem [shape: bf16[32,128], index: 1, kind: input, shape index: {}]   ;;  %s644_s2 = inlined_call_operand.vmem [shape: f32[1,128], index: 2, kind: input, shape index: {}]   ;;  %s645_s3 = inlined_call_operand.hbm [shape: bf16[128,128], index: 3, kind: input, shape index: {}]   ;;  %s646_s4 = inlined_call_operand.vmem [shape: f32[1,128], index: 4, kind: input, shape index: {}]   ;;  %s647_s5 = inlined_call_operand.hbm [shape: bf16[128,128], index: 5, kind: input, shape index: {}]   ;;  %s648_s6 = inlined_call_operand.vmem [shape: f32[1,128], index: 6, kind: input, shape index: {}]   ;;  %s649_s7 = inlined_call_operand.vmem [shape: bf16[16,128], index: 7, kind: output, shape index: {}]  }
   0x1   :  { %13 = vsyncpa [#allocation5], 0  ;;  %s542_s24 = smov [#allocation2]  }
   0x2   :  { %s25_s25 = sshll.u32 %s542_s24, 4  ;;  %s26_s25 = int_to_ptr.vmem [resolvable:$true] %s25_s25 }
   0x3   :  { %s506_s26 = scalar_lea.vmem %s26_s25, 1024  ;;  %p511_p1 = scmp.lt.s32.totalorder %s26_s25, %s26_s25 }
   0x4   :  { %p507_p0 = scmp.ne.s32.totalorder %s26_s25, %s506_s26  ;;  %p512_p2 = scmp.lt.s32.totalorder %s506_s26, %s506_s26 }
   0x6   :  { %p513_p3 = por %p512_p2, %p511_p1 }
   0x8   :  { %p514_p4 = pnand %p513_p3, %p507_p0 }
   0xa   :  { %517 = shalt.err (!%p514_p4)
}
   0xb   :  { %s543_s27 = smov 64   ;;  %s544_s28 = smov 4  }
   0xc   :  { %31 = dma.hbm_to_vmem [thread:$0]  %s645_s3, 1024, %s26_s25, [#allocation3], %s543_s27, %s543_s27, %s544_s28  }
   0xd   :  { %s545_s8 = smov [#allocation4]  }
   0xe   :  { %s39_s9 = sshll.u32 %s545_s8, 4  ;;  %s40_s9 = int_to_ptr.vmem [resolvable:$true] %s39_s9 }
   0xf   :  { %s526_s10 = scalar_lea.vmem %s40_s9, 1024  ;;  %p531_p6 = scmp.lt.s32.totalorder %s40_s9, %s40_s9 }
  0x10   :  { %p527_p5 = scmp.ne.s32.totalorder %s40_s9, %s526_s10  ;;  %p532_p7 = scmp.lt.s32.totalorder %s526_s10, %s526_s10 }
  0x12   :  { %p533_p8 = por %p532_p7, %p531_p6 }
  0x14   :  { %p534_p9 = pnand %p533_p8, %p527_p5 }
  0x16   :  { %537 = shalt.err (!%p534_p9)
}
  0x17   :  { %45 = dma.hbm_to_vmem [thread:$0]  %s647_s5, 1024, %s40_s9, [#allocation5], %s543_s27, %s543_s27, %s544_s28  }
  0x18   :  { %538 = dma.done.wait [#allocation3], 1024  }
  0x19   :  { %539 = vsyncadd [#allocation3], 4294966272 }
  0x1a   :  { %540 = dma.done.wait [#allocation5], 1024  }
  0x1b   :  { %541 = vsyncadd [#allocation5], 4294966272  ;;  %v546_v0 = vmov 0.0   ;;  %vm547_vm0 = vmmov 0   ;;  %v480_v1 = vld [vmem:[%s643_s1 + $0x8] sm:$0xff]   ;;  %v481_v2 = vld [vmem:[%s643_s1] sm:$0xff]  }
  0x1c   :  { %426 = vmatprep.subr.bf16.mxu0 %v546_v0  ;;  %430 = vmatprep.mubr.msk.bf16.mxu0 %vm547_vm0, %v546_v0  ;;  %v55_v3 = vld [vmem:[%s642_s0] sm:$0xff]  ;;  %v56_v4 = vld [vmem:[%s642_s0 + $0x8] sm:$0xff]  ;;  %v482_v5 = vld [vmem:[#allocation2 + $0x38] sm:$0xff]   ;;  %vm81_vm1 = vcmask 261120  }
  0x1d   :  { %434 = vmatprep.subr.bf16.mxu1 %v546_v0  ;;  %450 = vmatprep.mubr.msk.bf16.mxu1 %vm547_vm0, %v546_v0  ;;  %v57_v6 = vpack.c.bf16 %v56_v4, %v55_v3  ;;  %v483_v7 = vld [vmem:[#allocation2 + $0x30] sm:$0xff]   ;;  %v484_v8 = vld [vmem:[#allocation2 + $0x28] sm:$0xff]   ;;  %v485_v9 = vld [vmem:[#allocation2 + $0x20] sm:$0xff]  }
  0x1e   :  { %427 = vmatpush3.bf16.msra.mxu0 %v480_v1  ;;  %435 = vmatpush3.bf16.msra.mxu1 %v482_v5  ;;  %v486_v10 = vld [vmem:[#allocation2 + $0x18] sm:$0xff]   ;;  %v487_v11 = vld [vmem:[#allocation2 + $0x10] sm:$0xff]   ;;  %v488_v12 = vld [vmem:[#allocation2 + $0x8] sm:$0xff]  }
  0x1f   :  { %428 = vmatprep.subr.bf16.mxu0 %v546_v0  ;;  %436 = vmatprep.subr.bf16.mxu1 %v546_v0  ;;  %v489_v13 = vld [vmem:[#allocation2] sm:$0xff]   ;;  %v490_v14 = vld [vmem:[#allocation4 + $0x38] sm:$0xff]   ;;  %v491_v15 = vld [vmem:[#allocation4 + $0x30] sm:$0xff]  }
  0x20   :  { %v492_v16 = vld [vmem:[#allocation4 + $0x28] sm:$0xff]   ;;  %v493_v17 = vld [vmem:[#allocation4 + $0x20] sm:$0xff]   ;;  %v494_v18 = vld [vmem:[#allocation4 + $0x18] sm:$0xff]  }
  0x21   :  { %v374_v19 = vld [vmem:[%s644_s2] ss:$0 sm:$0xff]  ;;  %v495_v29 = vld [vmem:[#allocation4 + $0x10] sm:$0xff]   ;;  %v496_v30 = vld [vmem:[#allocation4 + $0x8] sm:$0xff]  }
  0x22   :  { %429 = vmatpush3.bf16.msra.mxu0 %v481_v2  ;;  %437 = vmatpush3.bf16.msra.mxu1 %v483_v7  ;;  %v497_v31 = vld [vmem:[#allocation4] sm:$0xff]  }
  0x23   :  { %454 = vmatprep.subr.bf16.mxu0 %v546_v0  ;;  %438 = vmatprep.subr.bf16.mxu1 %v546_v0  ;;  %v378_v32 = vld [vmem:[%s646_s4] ss:$0 sm:$0xff] }
  0x24   :  { %v387_v42 = vld [vmem:[%s648_s6] ss:$0 sm:$0xff] }
  0x25   :  { %431 = vmatmul.mubr.msk.bf16.vlgmr.msra.gmra.mxu0 %vm81_vm1, %v57_v6 }
  0x26   :  { %470 = vmatprep.mubr.msk.bf16.mxu0 %vm547_vm0, %v546_v0  ;;  %439 = vmatpush3.bf16.msra.mxu1 %v484_v8 }
  0x27   :  { %440 = vmatprep.subr.bf16.mxu1 %v546_v0  ;;  %455 = vmatpush3.bf16.msra.mxu0 %v490_v14 }
  0x28   :  { %456 = vmatprep.subr.bf16.mxu0 %v546_v0 }
  0x2a   :  { %441 = vmatpush3.bf16.msra.mxu1 %v485_v9 }
  0x2b   :  { %442 = vmatprep.subr.bf16.mxu1 %v546_v0  ;;  %457 = vmatpush3.bf16.msra.mxu0 %v491_v15 }
  0x2c   :  { %458 = vmatprep.subr.bf16.mxu0 %v546_v0 }
  0x2e   :  { %443 = vmatpush3.bf16.msra.mxu1 %v486_v10 }
  0x2f   :  { %444 = vmatprep.subr.bf16.mxu1 %v546_v0  ;;  %459 = vmatpush3.bf16.msra.mxu0 %v492_v16 }
  0x30   :  { %460 = vmatprep.subr.bf16.mxu0 %v546_v0 }
  0x32   :  { %445 = vmatpush3.bf16.msra.mxu1 %v487_v11 }
  0x33   :  { %446 = vmatprep.subr.bf16.mxu1 %v546_v0  ;;  %461 = vmatpush3.bf16.msra.mxu0 %v493_v17 }
  0x34   :  { %462 = vmatprep.subr.bf16.mxu0 %v546_v0 }
  0x36   :  { %447 = vmatpush3.bf16.msra.mxu1 %v488_v12 }
  0x37   :  { %448 = vmatprep.subr.bf16.mxu1 %v546_v0  ;;  %463 = vmatpush3.bf16.msra.mxu0 %v494_v18 }
  0x38   :  { %464 = vmatprep.subr.bf16.mxu0 %v546_v0 }
  0x3a   :  { %449 = vmatpush3.bf16.msra.mxu1 %v489_v13 }
  0x3b   :  { %465 = vmatpush3.bf16.msra.mxu0 %v495_v29 }
  0x3c   :  { %466 = vmatprep.subr.bf16.mxu0 %v546_v0 }
  0x3f   :  { %467 = vmatpush3.bf16.msra.mxu0 %v496_v30 }
  0x40   :  { %468 = vmatprep.subr.bf16.mxu0 %v546_v0 }
  0x43   :  { %469 = vmatpush3.bf16.msra.mxu0 %v497_v31 }
  0xe5   :  { %v119_v20 = vpop.f32.mrf.mxu0 }
  0xe6   :  { %v120_v22 = vadd.f32 %v374_v19, %v119_v20 }
  0xe7   :  { %v432_v21 = vpop.f32.mrf.mxu0 }
  0xe8   :  { %v126_v26 = vmax.f32 %v120_v22, 0.0 }
  0xe9   :  { %v122_v23 = vpop.f32.mrf.mxu0 }
  0xea   :  { %v123_v24 = vadd.f32 %v374_v19, %v122_v23 }
  0xeb   :  { %v433_v25 = vpop.f32.mrf.mxu0 }
  0xec   :  { %v127_v27 = vmax.f32 %v123_v24, 0.0 }
  0xee   :  { %v128_v28 = vpack.c.bf16 %v127_v27, %v126_v26 }
  0xf0   :  { %451 = vmatmul.mubr.bf16.vlgmr.msra.gmra.mxu1 %v128_v28 }
 0x1b0   :  { %v234_v33 = vpop.f32.mrf.mxu1 }
 0x1b1   :  { %v235_v35 = vadd.f32 %v378_v32, %v234_v33 }
 0x1b2   :  { %v452_v34 = vpop.f32.mrf.mxu1 }
 0x1b3   :  { %v241_v39 = vmax.f32 %v235_v35, 0.0 }
 0x1b4   :  { %v237_v36 = vpop.f32.mrf.mxu1 }
 0x1b5   :  { %v238_v37 = vadd.f32 %v378_v32, %v237_v36 }
 0x1b6   :  { %v453_v38 = vpop.f32.mrf.mxu1 }
 0x1b7   :  { %v242_v40 = vmax.f32 %v238_v37, 0.0 }
 0x1b9   :  { %v243_v41 = vpack.c.bf16 %v242_v40, %v241_v39 }
 0x1bb   :  { %471 = vmatmul.mubr.bf16.vlgmr.msra.gmra.mxu0 %v243_v41 }
 0x27b   :  { %v349_v43 = vpop.f32.mrf.mxu0 }
 0x27c   :  { %v350_v45 = vadd.f32 %v387_v42, %v349_v43 }
 0x27d   :  { %v472_v44 = vpop.f32.mrf.mxu0 }
 0x27e   :  { %v356_v49 = vmax.f32 %v350_v45, 0.0 }
 0x27f   :  { %v352_v46 = vpop.f32.mrf.mxu0 }
 0x280   :  { %v353_v47 = vadd.f32 %v387_v42, %v352_v46 }
 0x281   :  { %v473_v48 = vpop.f32.mrf.mxu0 }
 0x282   :  { %v357_v50 = vmax.f32 %v353_v47, 0.0 }
 0x284   :  { %v403_v51 = vpack.c.bf16 %v357_v50, %v356_v49 }
 0x286   :  { %404 = vst [vmem:[%s649_s7] sm:$0xff] %v403_v51  }
 0x287   :  { %372 = vsyncpa [#allocation3], 1 }
 0x288   :  { %373 = vsyncpa [#allocation5], 1 }

</bundles_post_ra>
